<compile_context>
chip_gen: v7x
topology: tpu7x:2x2x1
jax: 0.10.0
libtpu: 0.0.40
codegen_flags: <defaults>
</compile_context>

<pallas_src>
import jax
import jax.numpy as jnp
from jax.experimental import pallas as pl
from jax.experimental.pallas import tpu as pltpu


def attention_kernel(enc_ref, c_ref, v_ref, ctx_ref):
    """One batch tile of the collapsed attention layer.

    enc_ref: (B_TILE, seq, H)  encoder outputs
    c_ref:   (B_TILE, 1)       per-batch score offset = hid.v_hid + b_match.w2
    v_ref:   (1, H)            collapsed encoder projection v_enc
    ctx_ref: (B_TILE, H)       context vectors (lane-dense output)
    """
    enc = enc_ref[...]                                        # (B, S, H) f32
    v = v_ref[...]                                            # (1, H)

    # scores[b, s] = enc[b, s, :] . v_enc + c[b]   (lane reduction over H)
    scores = jnp.sum(enc * v, axis=-1) + c_ref[...]           # (B, S)

    # softmax over seq — last axis, lane-major, standard lane reduce
    s_max = jnp.max(scores, axis=-1, keepdims=True)
    e = jnp.exp(scores - s_max)
    attn = e / jnp.sum(e, axis=-1, keepdims=True)             # (B, S)

    # context[b, :] = attn[b, :] @ enc[b, :, :]   (batched matvec)
    ctx = jnp.einsum("bqs,bsh->bqh", attn[:, None, :], enc,
                     preferred_element_type=jnp.float32)      # (B, 1, H)
    ctx_ref[...] = ctx[:, 0, :]


def attention_layer(hidden_state, encoder_outputs, w_match, b_match,
                    w_to_weight, *, b_tile=8):
    """hidden_state: (1, batch, H); encoder_outputs: (batch, seq, H).

    Returns the context vector (batch, H), matching the PyTorch forward.
    """
    batch, seq, H = encoder_outputs.shape
    enc = jnp.asarray(encoder_outputs, jnp.float32)
    hid = jnp.asarray(hidden_state, jnp.float32)[0]           # (batch, H)

    # Collapse the two linear layers (no activation between them in the spec).
    w2 = jnp.asarray(w_to_weight, jnp.float32).reshape(1, H)  # (1, H)
    wm = jnp.asarray(w_match, jnp.float32)                    # (H, 2H)
    v_full = w2 @ wm                                          # (1, 2H)
    v_enc = v_full[:, :H]                                     # (1, H)
    v_hid = v_full[:, H:]                                     # (1, H)
    b = jnp.asarray(b_match, jnp.float32).reshape(1, H)

    # Per-batch scalar score offset (softmax-invariant, kept for fidelity).
    c = hid @ v_hid.T + b @ w2.T                              # (batch, 1)

    # Batch tiling: B_TILE rows per serial grid step (sublane-dense when >= 8).
    bt = min(b_tile, batch)
    n_blocks = pl.cdiv(batch, bt)
    batch_p = n_blocks * bt
    pad = batch_p - batch
    if pad:
        enc = jnp.pad(enc, ((0, pad), (0, 0), (0, 0)))
        c = jnp.pad(c, ((0, pad), (0, 0)))

    cost = pl.CostEstimate(
        flops=int(4 * batch_p * seq * H + 5 * batch_p * seq),
        transcendentals=int(batch_p * seq),
        bytes_accessed=int(4 * (enc.size + c.size + v_enc.size + batch_p * H)),
    )

    out = pl.pallas_call(
        attention_kernel,
        out_shape=jax.ShapeDtypeStruct((batch_p, H), jnp.float32),
        grid_spec=pltpu.PrefetchScalarGridSpec(
            num_scalar_prefetch=0,
            grid=(n_blocks,),
            in_specs=[
                pl.BlockSpec((bt, seq, H), lambda i: (i, 0, 0)),  # enc tile
                pl.BlockSpec((bt, 1), lambda i: (i, 0)),          # per-batch c
                pl.BlockSpec((1, H), lambda i: (0, 0)),           # v_enc
            ],
            out_specs=pl.BlockSpec((bt, H), lambda i: (i, 0)),    # lane-dense
        ),
        compiler_params=pltpu.CompilerParams(
            dimension_semantics=("parallel",)),
        cost_estimate=cost,
    )(enc, c, v_enc)
    return out[:batch]


def attention_layer_ref(hidden_state, encoder_outputs, w_match, b_match,
                        w_to_weight):
    """Pure-JAX reference mirroring the PyTorch forward literally."""
    batch, seq, H = encoder_outputs.shape
    hid = jnp.broadcast_to(
        jnp.transpose(hidden_state, (1, 0, 2)), (batch, seq, H))
    x = jnp.concatenate([encoder_outputs, hid], axis=2).reshape(-1, 2 * H)
    m = x @ w_match.T + b_match
    scores = (m @ w_to_weight.T).reshape(batch, seq)
    attn = jax.nn.softmax(scores, axis=1)
    return jnp.einsum("bs,bsh->bh", attn, encoder_outputs)


if __name__ == "__main__":
    batch, seq, hidden = 16, 16, 128   # small, but tile-friendly (8/128 aligned)

    key = jax.random.PRNGKey(0)
    k1, k2, k3, k4, k5 = jax.random.split(key, 5)

    # Parameter shapes follow the nn.Linear definitions in the spec.
    w_match = jax.random.normal(k1, (hidden, 2 * hidden), jnp.float32) * 0.05
    b_match = jax.random.normal(k2, (hidden,), jnp.float32) * 0.05
    w_to_weight = jax.random.normal(k3, (1, hidden), jnp.float32) * 0.05

    hidden_state = jax.random.normal(k4, (1, batch, hidden), jnp.float32)
    encoder_outputs = jax.random.normal(k5, (batch, seq, hidden), jnp.float32)

    ctx = attention_layer(hidden_state, encoder_outputs, w_match, b_match,
                          w_to_weight)
    ctx = jax.block_until_ready(ctx)

    ref = attention_layer_ref(hidden_state, encoder_outputs, w_match, b_match,
                              w_to_weight)
    assert ctx.shape == (batch, hidden)
    assert jnp.allclose(ctx, ref, atol=1e-4, rtol=1e-4), "mismatch vs reference"

    print("KERNEL_OK")
</pallas_src>

<mosaic_0001>
module attributes {stable_mosaic.version = 11 : i64} {
  func.func @attention_kernel(%arg0: i32, %arg1: memref<8x16x128xf32, #tpu.memory_space<vmem>>, %arg2: memref<8x1xf32, #tpu.memory_space<vmem>>, %arg3: memref<1x128xf32, #tpu.memory_space<vmem>>, %arg4: memref<8x128xf32, #tpu.memory_space<vmem>>) attributes {dimension_semantics = [#tpu.dimension_semantics<parallel>], iteration_bounds = array<i64: 2>, scalar_prefetch = 0 : i64, scratch_operands = 0 : i64, tpu.core_type = #tpu.core_type<tc>, window_params = [{transform_indices = @transform_0, window_bounds = array<i64: 8, 16, 128>}, {transform_indices = @transform_1, window_bounds = array<i64: 8, 1>}, {pipeline_mode = #tpu.pipeline_mode<synchronous>, transform_indices = @transform_2, window_bounds = array<i64: 1, 128>}, {transform_indices = @transform_3, window_bounds = array<i64: 8, 128>}]} {
    %c0 = arith.constant 0 : index
    %c0_0 = arith.constant 0 : index
    %c0_1 = arith.constant 0 : index
    %0 = vector.load %arg1[%c0, %c0_0, %c0_1] : memref<8x16x128xf32, #tpu.memory_space<vmem>>, vector<8x16x128xf32>
    %c0_2 = arith.constant 0 : index
    %c0_3 = arith.constant 0 : index
    %1 = vector.load %arg3[%c0_2, %c0_3] : memref<1x128xf32, #tpu.memory_space<vmem>>, vector<1x128xf32>
    %2 = vector.shape_cast %1 : vector<1x128xf32> to vector<1x1x128xf32>
    %3 = vector.broadcast %2 : vector<1x1x128xf32> to vector<8x16x128xf32>
    %4 = arith.mulf %0, %3 : vector<8x16x128xf32>
    %cst = arith.constant dense<0.000000e+00> : vector<8x16xf32>
    %5 = vector.multi_reduction <add>, %4, %cst [2] : vector<8x16x128xf32> to vector<8x16xf32>
    %c0_4 = arith.constant 0 : index
    %c0_5 = arith.constant 0 : index
    %6 = vector.load %arg2[%c0_4, %c0_5] : memref<8x1xf32, #tpu.memory_space<vmem>>, vector<8x1xf32>
    %7 = vector.broadcast %6 : vector<8x1xf32> to vector<8x16xf32>
    %8 = arith.addf %5, %7 : vector<8x16xf32>
    %cst_6 = arith.constant dense<0xFF800000> : vector<8xf32>
    %9 = vector.multi_reduction <maximumf>, %8, %cst_6 [1] : vector<8x16xf32> to vector<8xf32>
    %10 = vector.shape_cast %9 : vector<8xf32> to vector<8x1xf32>
    %11 = vector.broadcast %10 : vector<8x1xf32> to vector<8x16xf32>
    %12 = arith.subf %8, %11 : vector<8x16xf32>
    %13 = math.exp %12 : vector<8x16xf32>
    %cst_7 = arith.constant dense<0.000000e+00> : vector<8xf32>
    %14 = vector.multi_reduction <add>, %13, %cst_7 [1] : vector<8x16xf32> to vector<8xf32>
    %15 = vector.shape_cast %14 : vector<8xf32> to vector<8x1xf32>
    %16 = vector.broadcast %15 : vector<8x1xf32> to vector<8x16xf32>
    %17 = arith.divf %13, %16 : vector<8x16xf32>
    %18 = vector.shape_cast %17 : vector<8x16xf32> to vector<8x1x16xf32>
    "tpu.trace_start"() <{level = 10 : i32, message = "bqs,bsh->bqh"}> : () -> ()
    %cst_8 = arith.constant dense<0.000000e+00> : vector<8x1x128xf32>
    %19 = tpu.matmul %18, %0, %cst_8 {dimension_numbers = #tpu.dot_dimension_numbers<[2], [1], [1], [2], [0, 0, 0, 1, 1, 2], [0], [0]>} : vector<8x1x16xf32>, vector<8x16x128xf32>, vector<8x1x128xf32> -> vector<8x1x128xf32>
    "tpu.trace_stop"() : () -> ()
    %20 = vector.shape_cast %19 : vector<8x1x128xf32> to vector<8x128xf32>
    %c0_9 = arith.constant 0 : index
    %c0_10 = arith.constant 0 : index
    %21 = vector.load %arg4[%c0_9, %c0_10] : memref<8x128xf32, #tpu.memory_space<vmem>>, vector<8x128xf32>
    tpu.vector_store %arg4[%c0_9, %c0_10], %20 {strides = array<i32>} : memref<8x128xf32, #tpu.memory_space<vmem>>, vector<8x128xf32>,
    return
  }
  func.func @transform_0(%arg0: i32) -> (i32, i32, i32) {
    %c0_i32 = arith.constant 0 : i32
    %c0_i32_0 = arith.constant 0 : i32
    %c0_i32_1 = arith.constant 0 : i32
    return %arg0, %c0_i32, %c0_i32_0 : i32, i32, i32
  }
  func.func @transform_1(%arg0: i32) -> (i32, i32) {
    %c0_i32 = arith.constant 0 : i32
    %c0_i32_0 = arith.constant 0 : i32
    return %arg0, %c0_i32 : i32, i32
  }
  func.func @transform_2(%arg0: i32) -> (i32, i32) {
    %c0_i32 = arith.constant 0 : i32
    %c0_i32_0 = arith.constant 0 : i32
    %c0_i32_1 = arith.constant 0 : i32
    return %c0_i32, %c0_i32_0 : i32, i32
  }
  func.func @transform_3(%arg0: i32) -> (i32, i32) {
    %c0_i32 = arith.constant 0 : i32
    %c0_i32_0 = arith.constant 0 : i32
    return %arg0, %c0_i32 : i32, i32
  }
}

</mosaic_0001>

<bundles_post_ra>
// kernel: tpu_custom_call.1
= control target key start
LH: loop header
LB: loop body
LE: loop exit
PB: predicated region body
PF: predicated region fallthrough
CT: control target
= control target key end

     0   :  { %8 = vsyncpa [#allocation3], 0  ;;  %s2562_s0 = inlined_call_operand.hbm [shape: f32[16,16,128], index: 0, kind: input, shape index: {}]   ;;  %s2563_s1 = inlined_call_operand.vmem [shape: f32[16,1], index: 1, kind: input, shape index: {}]   ;;  %s2564_s2 = inlined_call_operand.vmem [shape: f32[1,128], index: 2, kind: input, shape index: {}]   ;;  %s2565_s3 = inlined_call_operand.hbm [shape: f32[16,128], index: 3, kind: output, shape index: {}]  }
   0x1   :  { %10 = vsyncpa [#allocation3 + $0x1], 0 }
   0x2   :  { %11 = vsyncpa [#allocation4], 0 }
   0x3   :  { %13 = vsyncpa [#allocation4 + $0x1], 0  ;;  %s1990_s12 = smov 0   ;;  %s1992_s13 = smov 0  }
   0x4   :  { %s1994_s14 = smov 0   ;;  %s1996_s15 = smov 0  }
   0x5 LB: > { %s2011_s16 = sadd.s32 4294967295, %s1960_s15   ;;  %s1632_s17 = sadd.s32 4294967294, %s1960_s15   ;;  %s1960_s15 = sphi %s1996_s15, %s2590_s15   ;;  %s1956_s14 = sphi %s1994_s14, %s2589_s14   ;;  %s1952_s13 = sphi %s1992_s13, %s2588_s13   ;;  %s1948_s12 = sphi %s1990_s12, %s2587_s12  }
   0x6   : > { %s2015_s18 = sadd.s32 1, %s1960_s15   ;;  %s26_s19 = sadd.s32 1, %s1956_s14 }
   0x7   : > { %s23_s20 = ssub.s32 %s1960_s15, %s2015_s18  ;;  %p33_p0 = scmp.ne.s32.totalorder %s1956_s14, %s1952_s13 }
   0x8   : > { %p24_p1 = scmp.eq.s32.totalorder %s23_s20, 0  ;;  %p34_p2 = scmp.eq.s32.totalorder %s1960_s15, 0 }
   0x9   : > { %p39_p3 = scmp.ne.s32.totalorder %s1952_s13, %s1948_s12  ;;  %p40_p4 = scmp.eq.s32.totalorder %s2011_s16, 0 }
   0xa   : > { %s2027_s21 = scalar_select %p24_p1, %s1956_s14, %s26_s19  }
   0xb   : > { %p2029_p5 = por %p34_p2, %p33_p0  ;;  %p2033_p6 = por %p40_p4, %p39_p3 }
   0xc   : > { %p110_p7 = scmp.eq.s32.totalorder %s2011_s16, 1  ;;  %p116_p8 = scmp.eq.s32.totalorder %s1632_s17, 1 }
   0xd   : > { %p1774_p10 = scmp.lt.s32.totalorder %s1960_s15, 2  ;;  %s139_s26 = sand.u32 1, %s1956_s14  }
   0xe   : > { %p2040_p11 = por %p110_p7, %p33_p0  ;;  %p2044_p12 = por %p116_p8, %p39_p3 }
   0xf   : > { %s1657_s27 = sshll.u32 %s1960_s15, 11  ;;  %s1635_s28 = sshll.u32 %s139_s26, 7 }
  0x10   : > { %s2571_s24 = scalar_select %p2040_p11, 1, 0 }
  0x11   : > { %s2572_s25 = scalar_select %p2044_p12, 1, 0 }
  0x12   : > { %s2053_s4 = scalar_lea.hbm %s2562_s0, %s1657_s27  ;;  %s143_s5 = scalar_lea.vmem [#allocation2], %s1635_s28 }
  0x13   : > { %s151_s6 = sshll.u32 %s143_s5, 4  ;;  %p2057_p13 = pnand %p1774_p10, %p2029_p5  ;;  %s2061_s6 = int_to_ptr.vmem [resolvable:$true] %s151_s6 }
  0x14   : > { %s2063_s8 = scalar_lea.sflag [#allocation3], %s139_s26  ;;  %s1864_s9 = scalar_lea.hbm %s2053_s4, 2048 }
  0x15   : > { %p1865_p0 = scmp.ne.s32.totalorder %s2053_s4, %s1864_s9  ;;  %p1866_p1 = pneg %p2057_p13 }
  0x16   : > { %s1869_s17 = scalar_lea.hbm %s2562_s0, 4096  ;;  %p1870_p4 = scmp.lt.u32.totalorder %s2053_s4, %s2562_s0 }
  0x17   : > { %p1867_p2 = pnand %p1866_p1, %p1865_p0  ;;  %p1871_p5 = scmp.lt.u32.totalorder %s1869_s17, %s1864_s9 }
  0x18   : > { %p1873_p8 = scmp.lt.u32.totalorder %s1864_s9, %s2053_s4 }
  0x19   : > { %p1868_p3 = pneg %p1867_p2  ;;  %p1872_p7 = por %p1871_p5, %p1870_p4 }
  0x1b   : > { %p1874_p10 = por %p1873_p8, %p1872_p7 }
  0x1d   : > { %p1875_p9 = pnand %p1874_p10, %p1868_p3 }
  0x1f   : > { %1878 = shalt.err (!%p1875_p9)
}
  0x20   : > { %s1879_s22 = scalar_lea.vmem %s2061_s6, 2048  ;;  %s1962_s26 = smov [#allocation2]  }
  0x21   : > { %p1880_p0 = scmp.ne.s32.totalorder %s2061_s6, %s1879_s22  ;;  %s1884_s27 = sshll.u32 %s1962_s26, 4  ;;  %s1885_s27 = int_to_ptr.vmem [resolvable:$false] %s1884_s27 }
  0x22   : > { %s1886_s28 = scalar_lea.vmem %s1885_s27, 4096  ;;  %p1887_p11 = scmp.lt.s32.totalorder %s2061_s6, %s1885_s27 }
  0x23   : > { %p1882_p2 = pnand %p1880_p0, %p1866_p1  ;;  %p1888_p4 = scmp.lt.s32.totalorder %s1886_s28, %s1879_s22 }
  0x25   : > { %p1883_p12 = pneg %p1882_p2  ;;  %p1889_p5 = por %p1888_p4, %p1887_p11 }
  0x27   : > { %p1890_p7 = pnand %p1889_p5, %p1883_p12 }
  0x29   : > { %1893 = shalt.err (!%p1890_p7)
}
  0x2a   : > { %s1963_s29 = smov 128   ;;  %s1964_s30 = smov 8  }
  0x2b   : > { %1769 = dma.hbm_to_vmem [thread:$0]  (!%p2057_p13), %s2053_s4, 2048, %s2061_s6, %s2063_s8, %s1963_s29, %s1963_s29, %s1964_s30  }
  0x2c   : > { %p1639_p9 = scmp.ge.s32.totalorder %s1960_s15, 1  ;;  %p166_p1 = scmp.lt.s32.totalorder %s1960_s15, 3 }
  0x2e   : > { %p167_p3 = pnand %p1639_p9, %p166_p1 }
  0x30   : > { %170 = sbr.rel (%p167_p3) target bundleno = 1328 (0x530), region = 32 }
  0x37   : > { %s2094_s5 = sand.u32 1, %s1952_s13  }
  0x38   : > { %s1640_s9 = sshll.u32 %s2094_s5, 7  ;;  %s173_s10 = scalar_lea.sflag [#allocation3], %s2094_s5 }
  0x39   : > { %s2098_s11 = scalar_lea.vmem [#allocation2], %s1640_s9 }
  0x3a   : > { %1939 = dma.done.wait (%p2033_p6), %s173_s10, 2048  }
  0x3b   : > { %1941 = vsyncadd (%p2033_p6), %s173_s10, 4294965248  ;;  %v1965_v0 = vmov 0   ;;  %v2105_v1 = vld [vmem:[%s2098_s11] sm:$0xff]  ;;  %v2111_v3 = vld [vmem:[%s2098_s11 + $0x10] sm:$0xff]  ;;  %p204_p6 = scmp.lt.s32.totalorder %s2011_s16, 1  ;;  %v284_v40 = vlaneseq  ;;  %vm415_vm0 = vcmask 130112  }
  0x3c   : > { %1814 = vset.pattern.permute.xlu0 %v1965_v0  ;;  %1815 = vset.pattern.permute.xlu1 %v1965_v0  ;;  %v1643_v2 = vld [vmem:[%s2564_s2] ss:$0 sm:$0xff]  ;;  %v2116_v6 = vld [vmem:[%s2098_s11 + $0x8] sm:$0xff]  ;;  %v2119_v7 = vld [vmem:[%s2098_s11 + $0x18] sm:$0xff]  ;;  %vm480_vm1 = vcmask 1041409   ;;  %vm482_vm2 = vcmask 1042434  }
  0x3d   : > { %v231_v4 = vmul.f32 %v1643_v2, %v2105_v1  ;;  %v233_v5 = vmul.f32 %v1643_v2, %v2111_v3  ;;  %v2122_v8 = vld [vmem:[%s2098_s11 + $0x20] sm:$0xff]  ;;  %v2125_v9 = vld [vmem:[%s2098_s11 + $0x28] sm:$0xff]  ;;  %v232_v10 = vmul.f32 %v1643_v2, %v2116_v6  ;;  %v234_v11 = vmul.f32 %v1643_v2, %v2119_v7  ;;  %v2132_v13 = vld [vmem:[%s2098_s11 + $0x30] sm:$0xff]  ;;  %s205_s23 = scalar_select %p204_p6, %s2011_s16, 1 }
  0x3e   : > { %v2135_v14 = vld [vmem:[%s2098_s11 + $0x38] sm:$0xff]  ;;  %v2138_v15 = vld [vmem:[%s2098_s11 + $0x40] sm:$0xff]  ;;  %v2143_v17 = vld [vmem:[%s2098_s11 + $0x48] sm:$0xff]  ;;  %v235_v27 = vmul.f32 %v1643_v2, %v2122_v8  ;;  %v236_v28 = vmul.f32 %v1643_v2, %v2125_v9  ;;  %v237_v30 = vmul.f32 %v1643_v2, %v2132_v13  ;;  %v285_v42 = vshrl.u32 %v284_v40, 7  ;;  %s1641_s20 = sshll.u32 %s2094_s5, 3  ;;  %s1653_s22 = sshll.u32 %s2011_s16, 7 }
  0x3f   : > { %247 = vadd.xlane.f32.xlu0 %v231_v4  ;;  %251 = vadd.xlane.f32.xlu1 %v233_v5  ;;  %v2146_v18 = vld [vmem:[%s2098_s11 + $0x50] sm:$0xff]  ;;  %v2149_v19 = vld [vmem:[%s2098_s11 + $0x58] sm:$0xff]  ;;  %v2156_v22 = vld [vmem:[%s2098_s11 + $0x60] sm:$0xff]  ;;  %v238_v31 = vmul.f32 %v1643_v2, %v2135_v14  ;;  %v239_v32 = vmul.f32 %v1643_v2, %v2138_v15  ;;  %v240_v33 = vmul.f32 %v1643_v2, %v2143_v17  ;;  %s1642_s7 = sshll.u32 %s205_s23, 3  ;;  %v405_v43 = vand.u32 127, %v284_v40  ;;  %s202_s26 = scalar_lea.vmem [#allocation5], %s1641_s20 }
  0x40   : > { %v2159_v23 = vld [vmem:[%s2098_s11 + $0x68] sm:$0xff]  ;;  %v2164_v25 = vld [vmem:[%s2098_s11 + $0x70] sm:$0xff]  ;;  %v2167_v26 = vld [vmem:[%s2098_s11 + $0x78] sm:$0xff]  ;;  %v241_v34 = vmul.f32 %v1643_v2, %v2146_v18  ;;  %v242_v35 = vmul.f32 %v1643_v2, %v2149_v19  ;;  %v243_v36 = vmul.f32 %v1643_v2, %v2156_v22  ;;  %s207_s19 = scalar_lea.vmem %s2563_s1, %s1642_s7  ;;  %v2192_v58 = vsub.s32 3, %v285_v42  ;;  %s1550_s27 = sshll.u32 %s202_s26, 4  ;;  %s2519_s27 = int_to_ptr.vmem [resolvable:$true] %s1550_s27 }
  0x41   : > { %2574 = vst [vmem:[#allocation8_spill] sm:$0xff] %v2164_v25  ;;  %2575 = vst [vmem:[#allocation9_spill] sm:$0xff] %v2167_v26  ;;  %v244_v37 = vmul.f32 %v1643_v2, %v2159_v23  ;;  %v245_v38 = vmul.f32 %v1643_v2, %v2164_v25  ;;  %v246_v39 = vmul.f32 %v1643_v2, %v2167_v26  ;;  %v279_v41 = vld [vmem:[%s207_s19] sm:$0xff]  ;;  %v410_v45 = vadd.s32 4294967288, %v405_v43  ;;  %s2517_s30 = scalar_lea.hbm %s2565_s3, %s1653_s22  ;;  %s1537_s9 = scalar_lea.sflag [#allocation4], %s2094_s5 }
  0x42   : > { %v2188_v44 = vsub.s32 %v405_v43, %v285_v42  ;;  %v2194_v59 = vsub.s32 0, %v285_v42  ;;  %v2196_v60 = vsub.s32 4, %v285_v42  ;;  %v2200_v2 = vsub.s32 5, %v285_v42  ;;  %s1894_s16 = scalar_lea.vmem %s2519_s27, 128  ;;  %p2584_p12 = scmp.ne.s32.totalorder %s2571_s24, 0 }
  0x43   : > { %249 = vadd.xlane.f32.xlu0 %v232_v10  ;;  %253 = vadd.xlane.f32.xlu1 %v234_v11  ;;  %v2190_v46 = vsub.s32 %v410_v45, %v285_v42  ;;  %v2207_v11 = vsub.s32 1, %v285_v42  ;;  %vm484_vm3 = vcmask 1043459   ;;  %vm486_vm4 = vcmask 1044484   ;;  %p1895_p11 = scmp.ne.s32.totalorder %s2519_s27, %s1894_s16  ;;  %s1969_s10 = smov [#allocation5]  }
  0x44   : > { %vm488_vm5 = vcmask 1045509   ;;  %vm490_vm6 = vcmask 1046534   ;;  %vm492_vm7 = vcmask 1047559   ;;  %vm495_vm8 = vcmask 130048   ;;  %s1898_s11 = sshll.u32 %s1969_s10, 4  ;;  %s1899_s11 = int_to_ptr.vmem [resolvable:$false] %s1898_s11 }
  0x45   : > { %vm1967_vm9 = vmmov 0   ;;  %p1896_p13 = pnand %p1895_p11, %p2584_p12  ;;  %s1900_s4 = scalar_lea.vmem %s1899_s11, 256 }
  0x46   : > { %p1901_p10 = scmp.lt.s32.totalorder %s2519_s27, %s1899_s11  ;;  %p1902_p0 = scmp.lt.s32.totalorder %s1900_s4, %s1894_s16 }
  0x47   : > { %255 = vadd.xlane.f32.xlu0 %v235_v27  ;;  %257 = vadd.xlane.f32.xlu1 %v236_v28  ;;  %v2211_v28 = vsub.s32 6, %v285_v42  ;;  %p1897_p8 = pneg %p1896_p13 }
  0x48   : > { %p1903_p2 = por %p1902_p0, %p1901_p10 }
  0x4a   : > { %p1904_p4 = pnand %p1903_p2, %p1897_p8 }
  0x4b   : > { %259 = vadd.xlane.f32.xlu0 %v237_v30  ;;  %261 = vadd.xlane.f32.xlu1 %v238_v31 }
  0x4f   : > { %263 = vadd.xlane.f32.xlu0 %v239_v32  ;;  %265 = vadd.xlane.f32.xlu1 %v240_v33 }
  0x53   : > { %267 = vadd.xlane.f32.xlu0 %v241_v34  ;;  %269 = vadd.xlane.f32.xlu1 %v242_v35  ;;  %v2221_v34 = vsub.s32 7, %v285_v42 }
  0x57   : > { %271 = vadd.xlane.f32.xlu0 %v243_v36  ;;  %273 = vadd.xlane.f32.xlu1 %v244_v37 }
  0x5b   : > { %275 = vadd.xlane.f32.xlu1 %v245_v38  ;;  %v2228_v38 = vsub.s32 2, %v285_v42 }
  0x5f   : > { %277 = vadd.xlane.f32.xlu1 %v246_v39 }
  0x6d   : > { %282 = vperm.xlu0 %1814, %v279_v41  }
  0xcc   : > { %v248_v47 = vpop.xlane.xlu0 %247  ;;  %v252_v49 = vpop.xlane.xlu1 %251 }
  0xd0   : > { %v250_v48 = vpop.xlane.xlu0 %249  ;;  %v254_v52 = vpop.xlane.xlu1 %253 }
  0xd4   : > { %v256_v50 = vpop.xlane.xlu0 %255  ;;  %v258_v54 = vpop.xlane.xlu1 %257 }
  0xd8   : > { %v260_v51 = vpop.xlane.xlu0 %259  ;;  %v262_v56 = vpop.xlane.xlu1 %261 }
  0xdc   : > { %v264_v53 = vpop.xlane.xlu0 %263  ;;  %v266_v61 = vpop.xlane.xlu1 %265 }
  0xe0   : > { %v268_v55 = vpop.xlane.xlu0 %267  ;;  %v270_v27 = vpop.xlane.xlu1 %269 }
  0xe4   : > { %v272_v57 = vpop.xlane.xlu0 %271  ;;  %v274_v39 = vpop.xlane.xlu1 %273 }
  0xec   : > { %v283_v62 = vpop.permute.xlu0 %282 }
  0xed   : > { %v299_v63 = vrot.slane %v283_v62, %v2192_v58  ;;  %v287_v0 = vrot.slane %v283_v62, %v2194_v59  ;;  %v303_v10 = vrot.slane %v283_v62, %v2196_v60  ;;  %v307_v32 = vrot.slane %v283_v62, %v2200_v2 }
  0xee   : > { %v291_v33 = vrot.slane %v283_v62, %v2207_v11  ;;  %v311_v37 = vrot.slane %v283_v62, %v2211_v28  ;;  %v315_v40 = vrot.slane %v283_v62, %v2221_v34  ;;  %v295_v45 = vrot.slane %v283_v62, %v2228_v38 }
  0xef   : > { %v2202_v4 = vadd.f32 %v299_v63, %v260_v51  ;;  %v2204_v5 = vadd.f32 %v287_v0, %v248_v47  ;;  %v2213_v30 = vadd.f32 %v303_v10, %v264_v53  ;;  %v2215_v31 = vadd.f32 %v287_v0, %v250_v48  ;;  %v276_v47 = vpop.xlane.xlu1 %275 }
  0xf0   : > { %v2223_v35 = vadd.f32 %v307_v32, %v268_v55  ;;  %v2225_v36 = vadd.f32 %v291_v33, %v252_v49  ;;  %v2233_v41 = vadd.f32 %v311_v37, %v272_v57  ;;  %v2235_v43 = vadd.f32 %v291_v33, %v254_v52 }
  0xf1   : > { %375 = vperm.xlu0 %1814, %v2202_v4   ;;  %357 = vperm.xlu1 %1815, %v2204_v5   ;;  %v2240_v42 = vadd.f32 %v315_v40, %v276_v47  ;;  %v2242_v48 = vadd.f32 %v295_v45, %v256_v50  ;;  %v2246_v49 = vadd.f32 %v295_v45, %v258_v54 }
  0xf2   : > { %v2249_v51 = vadd.f32 %v299_v63, %v262_v56  ;;  %v2252_v52 = vadd.f32 %v303_v10, %v266_v61  ;;  %v2255_v53 = vadd.f32 %v307_v32, %v270_v27  ;;  %v2258_v50 = vadd.f32 %v311_v37, %v274_v39 }
  0xf3   : > { %v278_v55 = vpop.xlane.xlu1 %277 }
  0xf4   : > { %v2261_v54 = vadd.f32 %v315_v40, %v278_v55 }
  0xf5   : > { %381 = vperm.xlu0 %1814, %v2213_v30   ;;  %360 = vperm.xlu1 %1815, %v2215_v31  }
  0xf9   : > { %387 = vperm.xlu0 %1814, %v2223_v35   ;;  %363 = vperm.xlu1 %1815, %v2225_v36  }
  0xfd   : > { %393 = vperm.xlu0 %1814, %v2233_v41   ;;  %366 = vperm.xlu1 %1815, %v2235_v43  }
 0x101   : > { %399 = vperm.xlu0 %1814, %v2240_v42   ;;  %369 = vperm.xlu1 %1815, %v2242_v48  }
 0x105   : > { %372 = vperm.xlu1 %1815, %v2246_v49  }
 0x109   : > { %378 = vperm.xlu1 %1815, %v2249_v51  }
 0x10d   : > { %384 = vperm.xlu1 %1815, %v2252_v52  }
 0x111   : > { %390 = vperm.xlu1 %1815, %v2255_v53  }
 0x115   : > { %396 = vperm.xlu1 %1815, %v2258_v50  }
 0x119   : > { %402 = vperm.xlu1 %1815, %v2261_v54  }
 0x170   : > { %v358_v56 = vpop.permute.xlu1 %357  ;;  %v376_v63 = vpop.permute.xlu0 %375 }
 0x171   : > { %v438_v16 = vrot.slane %v376_v63, %v2188_v44 }
 0x174   : > { %v361_v57 = vpop.permute.xlu1 %360  ;;  %v382_v10 = vpop.permute.xlu0 %381 }
 0x175   : > { %v414_v55 = vrot.slane %v361_v57, %v2190_v46  ;;  %v447_v57 = vrot.slane %v382_v10, %v2188_v44 }
 0x178   : > { %v364_v62 = vpop.permute.xlu1 %363  ;;  %v388_v33 = vpop.permute.xlu0 %387 }
 0x179   : > { %v420_v29 = vrot.slane %v364_v62, %v2188_v44 }
 0x17c   : > { %v367_v61 = vpop.permute.xlu1 %366  ;;  %v394_v39 = vpop.permute.xlu0 %393 }
 0x17d   : > { %v424_v37 = vrot.slane %v367_v61, %v2190_v46  ;;  %v409_v61 = vrot.slane %v358_v56, %v2188_v44  ;;  %v465_v56 = vrot.slane %v394_v39, %v2188_v44 }
 0x17f   : > { %v425_v12 = vsel %vm415_vm0, %v424_v37, %v420_v29  ;;  %v416_v25 = vsel %vm415_vm0, %v414_v55, %v409_v61 }
 0x180   : > { %v370_v0 = vpop.permute.xlu1 %369  ;;  %v481_v29 = vsel %vm480_vm1, %v425_v12, %v416_v25  ;;  %v400_v37 = vpop.permute.xlu0 %399 }
 0x181   : > { %v429_v21 = vrot.slane %v370_v0, %v2188_v44  ;;  %v456_v0 = vrot.slane %v388_v33, %v2188_v44 }
 0x184   : > { %v373_v27 = vpop.permute.xlu1 %372 }
 0x185   : > { %v433_v47 = vrot.slane %v373_v27, %v2190_v46 }
 0x187   : > { %v434_v62 = vsel %vm415_vm0, %v433_v47, %v429_v21 }
 0x188   : > { %v379_v32 = vpop.permute.xlu1 %378  ;;  %v483_v21 = vsel %vm482_vm2, %v434_v62, %v481_v29 }
 0x189   : > { %v442_v24 = vrot.slane %v379_v32, %v2190_v46 }
 0x18c   : > { %v385_v45 = vpop.permute.xlu1 %384 }
 0x18d   : > { %v451_v20 = vrot.slane %v385_v45, %v2190_v46  ;;  %v443_v45 = vsel %vm415_vm0, %v442_v24, %v438_v16  ;;  %v474_v24 = vrot.slane %v400_v37, %v2188_v44 }
 0x18f   : > { %v452_v10 = vsel %vm415_vm0, %v451_v20, %v447_v57 }
 0x190   : > { %v391_v40 = vpop.permute.xlu1 %390 }
 0x191   : > { %v460_v27 = vrot.slane %v391_v40, %v2190_v46  ;;  %v485_v40 = vsel %vm484_vm3, %v443_v45, %v483_v21 }
 0x192   : > { %v487_v39 = vsel %vm486_vm4, %v452_v10, %v485_v40 }
 0x193   : > { %v461_v47 = vsel %vm415_vm0, %v460_v27, %v456_v0 }
 0x194   : > { %v397_v32 = vpop.permute.xlu1 %396  ;;  %v489_v20 = vsel %vm488_vm5, %v461_v47, %v487_v39 }
 0x195   : > { %v469_v63 = vrot.slane %v397_v32, %v2190_v46 }
 0x197   : > { %v470_v33 = vsel %vm415_vm0, %v469_v63, %v465_v56 }
 0x198   : > { %v403_v16 = vpop.permute.xlu1 %402  ;;  %v491_v55 = vsel %vm490_vm6, %v470_v33, %v489_v20 }
 0x199   : > { %v478_v12 = vrot.slane %v403_v16, %v2190_v46 }
 0x19b   : > { %v479_v25 = vsel %vm415_vm0, %v478_v12, %v474_v24 }
 0x19c   : > { %v493_v61 = vsel %vm492_vm7, %v479_v25, %v491_v55 }
 0x19d   : > { %v496_v27 = vsel %vm495_vm8, %v493_v61, -inf }
 0x19e   : > { %497 = vmax.xlane.f32.xlu0 %v496_v27 }
 0x22b   : > { %v498_v57 = vpop.xlane.xlu0 %497 }
 0x22c   : > { %v503_v62 = vrot.slane %v498_v57, %v2194_v59  ;;  %v507_v0 = vrot.slane %v498_v57, %v2207_v11  ;;  %v519_v45 = vrot.slane %v498_v57, %v2196_v60  ;;  %v2304_v21 = vrot.slane %v498_v57, %v2221_v34 }
 0x22d   : > { %v511_v40 = vrot.slane %v498_v57, %v2228_v38  ;;  %v515_v39 = vrot.slane %v498_v57, %v2192_v58 }
 0x22e   : > { %v540_v32 = vsub.f32 %v2204_v5, %v503_v62  ;;  %v541_v63 = vsub.f32 %v2215_v31, %v503_v62  ;;  %v542_v29 = vsub.f32 %v2225_v36, %v507_v0  ;;  %v548_v37 = vsub.f32 %v2213_v30, %v519_v45 }
 0x22f   : > { %v543_v5 = vsub.f32 %v2235_v43, %v507_v0  ;;  %v554_v31 = vsub.f32 %v2240_v42, %v2304_v21  ;;  %v544_v36 = vsub.f32 %v2242_v48, %v511_v40  ;;  %v545_v12 = vsub.f32 %v2246_v49, %v511_v40 }
 0x230   : > { %v556_v56 = vmul.f32 1.442695, %v540_v32  ;;  %v558_v10 = vmul.f32 1.442695, %v541_v63  ;;  %v560_v47 = vmul.f32 1.442695, %v542_v29  ;;  %v546_v42 = vsub.f32 %v2202_v4, %v515_v39 }
 0x231   : > { %v572_v33 = vmul.f32 1.442695, %v548_v37  ;;  %v562_v16 = vmul.f32 1.442695, %v543_v5  ;;  %v584_v24 = vmul.f32 1.442695, %v554_v31  ;;  %v547_v49 = vsub.f32 %v2249_v51, %v515_v39 }
 0x232   : > { %1816 = vpow2.f32 %v556_v56  ;;  %v564_v43 = vmul.f32 1.442695, %v544_v36  ;;  %v566_v48 = vmul.f32 1.442695, %v545_v12  ;;  %v568_v61 = vmul.f32 1.442695, %v546_v42 }
 0x233   : > { %1818 = vpow2.f32 %v558_v10  ;;  %v523_v4 = vrot.slane %v498_v57, %v2200_v2  ;;  %v549_v32 = vsub.f32 %v2252_v52, %v519_v45  ;;  %v570_v0 = vmul.f32 1.442695, %v547_v49 }
 0x234   : > { %1820 = vpow2.f32 %v560_v47  ;;  %v527_v37 = vrot.slane %v498_v57, %v2211_v28 }
 0x235   : > { %1822 = vpow2.f32 %v572_v33  ;;  %v550_v51 = vsub.f32 %v2223_v35, %v523_v4  ;;  %v574_v56 = vmul.f32 1.442695, %v549_v32  ;;  %v551_v52 = vsub.f32 %v2255_v53, %v523_v4 }
 0x236   : > { %1824 = vpow2.f32 %v562_v16  ;;  %v552_v47 = vsub.f32 %v2233_v41, %v527_v37  ;;  %v553_v5 = vsub.f32 %v2258_v50, %v527_v37  ;;  %v555_v53 = vsub.f32 %v2261_v54, %v2304_v21 }
 0x237   : > { %1826 = vpow2.f32 %v584_v24  ;;  %v576_v45 = vmul.f32 1.442695, %v550_v51  ;;  %v578_v35 = vmul.f32 1.442695, %v551_v52 }
 0x238   : > { %1828 = vpow2.f32 %v564_v43  ;;  %v580_v57 = vmul.f32 1.442695, %v552_v47  ;;  %v582_v31 = vmul.f32 1.442695, %v553_v5  ;;  %v586_v36 = vmul.f32 1.442695, %v555_v53 }
 0x239   : > { %1830 = vpow2.f32 %v566_v48 }
 0x23a   : > { %1832 = vpow2.f32 %v568_v61 }
 0x23b   : > { %1834 = vpow2.f32 %v570_v0 }
 0x23c   : > { %v2311_v30 = vpop.eup %1816  ;;  %1836 = vpow2.f32 %v574_v56 }
 0x23d   : > { %605 = vperm.xlu1 %1815, %v2311_v30   ;;  %v2316_v20 = vpop.eup %1818  ;;  %1838 = vpow2.f32 %v576_v45 }
 0x23e   : > { %v2320_v25 = vpop.eup %1820  ;;  %1840 = vpow2.f32 %v578_v35 }
 0x23f   : > { %v2322_v55 = vpop.eup %1822  ;;  %1842 = vpow2.f32 %v580_v57 }
 0x240   : > { %629 = vperm.xlu0 %1814, %v2322_v55   ;;  %v2327_v27 = vpop.eup %1824  ;;  %1844 = vpow2.f32 %v582_v31 }
 0x241   : > { %608 = vperm.xlu1 %1815, %v2316_v20   ;;  %v2330_v62 = vpop.eup %1826  ;;  %1846 = vpow2.f32 %v586_v36 }
 0x242   : > { %v2335_v63 = vpop.eup %1828 }
 0x243   : > { %v2339_v29 = vpop.eup %1830 }
 0x244   : > { %647 = vperm.xlu0 %1814, %v2330_v62   ;;  %v2344_v10 = vpop.eup %1832 }
 0x245   : > { %611 = vperm.xlu1 %1815, %v2320_v25   ;;  %v2348_v40 = vpop.eup %1834 }
 0x246   : > { %v2352_v33 = vpop.eup %1836 }
 0x247   : > { %v2357_v41 = vpop.eup %1838 }
 0x248   : > { %v2360_v16 = vpop.eup %1840 }
 0x249   : > { %614 = vperm.xlu1 %1815, %v2327_v27   ;;  %v2363_v50 = vpop.eup %1842 }
 0x24a   : > { %v2366_v24 = vpop.eup %1844 }
 0x24b   : > { %v2369_v54 = vpop.eup %1846 }
 0x24d   : > { %617 = vperm.xlu1 %1815, %v2335_v63  }
 0x251   : > { %620 = vperm.xlu1 %1815, %v2339_v29  }
 0x255   : > { %623 = vperm.xlu1 %1815, %v2344_v10  }
 0x259   : > { %626 = vperm.xlu1 %1815, %v2348_v40  }
 0x25d   : > { %632 = vperm.xlu1 %1815, %v2352_v33  }
 0x261   : > { %635 = vperm.xlu1 %1815, %v2357_v41  }
 0x265   : > { %638 = vperm.xlu1 %1815, %v2360_v16  }
 0x269   : > { %641 = vperm.xlu1 %1815, %v2363_v50  }
 0x26d   : > { %644 = vperm.xlu1 %1815, %v2366_v24  }
 0x271   : > { %650 = vperm.xlu1 %1815, %v2369_v54  }
 0x2bc   : > { %v606_v21 = vpop.permute.xlu1 %605 }
 0x2bd   : > { %v655_v53 = vrot.slane %v606_v21, %v2188_v44 }
 0x2bf   : > { %v630_v56 = vpop.permute.xlu0 %629 }
 0x2c0   : > { %v609_v39 = vpop.permute.xlu1 %608 }
 0x2c1   : > { %v659_v45 = vrot.slane %v609_v39, %v2190_v46 }
 0x2c3   : > { %v648_v21 = vpop.permute.xlu0 %647 }
 0x2c4   : > { %v612_v12 = vpop.permute.xlu1 %611 }
 0x2c5   : > { %v664_v47 = vrot.slane %v612_v12, %v2188_v44  ;;  %v660_v12 = vsel %vm415_vm0, %v659_v45, %v655_v53 }
 0x2c8   : > { %v615_v43 = vpop.permute.xlu1 %614 }
 0x2c9   : > { %v668_v51 = vrot.slane %v615_v43, %v2190_v46 }
 0x2cb   : > { %v669_v31 = vsel %vm415_vm0, %v668_v51, %v664_v47 }
 0x2cc   : > { %v618_v42 = vpop.permute.xlu1 %617  ;;  %v724_v51 = vsel %vm480_vm1, %v669_v31, %v660_v12 }
 0x2cd   : > { %v673_v5 = vrot.slane %v618_v42, %v2188_v44 }
 0x2d0   : > { %v621_v48 = vpop.permute.xlu1 %620 }
 0x2d1   : > { %v677_v37 = vrot.slane %v621_v48, %v2190_v46  ;;  %v691_v48 = vrot.slane %v630_v56, %v2188_v44 }
 0x2d3   : > { %v678_v39 = vsel %vm415_vm0, %v677_v37, %v673_v5 }
 0x2d4   : > { %v624_v49 = vpop.permute.xlu1 %623  ;;  %v725_v56 = vsel %vm482_vm2, %v678_v39, %v724_v51 }
 0x2d5   : > { %v682_v36 = vrot.slane %v624_v49, %v2188_v44 }
 0x2d8   : > { %v627_v61 = vpop.permute.xlu1 %626 }
 0x2d9   : > { %v686_v35 = vrot.slane %v627_v61, %v2190_v46 }
 0x2db   : > { %v687_v61 = vsel %vm415_vm0, %v686_v35, %v682_v36 }
 0x2dc   : > { %v633_v4 = vpop.permute.xlu1 %632  ;;  %v726_v47 = vsel %vm484_vm3, %v687_v61, %v725_v56 }
 0x2dd   : > { %v695_v57 = vrot.slane %v633_v4, %v2190_v46 }
 0x2df   : > { %v696_v49 = vsel %vm415_vm0, %v695_v57, %v691_v48 }
 0x2e0   : > { %v636_v32 = vpop.permute.xlu1 %635 }
 0x2e1   : > { %v700_v42 = vrot.slane %v636_v32, %v2188_v44  ;;  %v718_v32 = vrot.slane %v648_v21, %v2188_v44 }
 0x2e4   : > { %v639_v0 = vpop.permute.xlu1 %638 }
 0x2e5   : > { %v704_v43 = vrot.slane %v639_v0, %v2190_v46 }
 0x2e7   : > { %v705_v37 = vsel %vm415_vm0, %v704_v43, %v700_v42 }
 0x2e8   : > { %v642_v52 = vpop.permute.xlu1 %641 }
 0x2e9   : > { %v709_v0 = vrot.slane %v642_v52, %v2188_v44 }
 0x2ec   : > { %v645_v26 = vpop.permute.xlu1 %644 }
 0x2ed   : > { %v713_v4 = vrot.slane %v645_v26, %v2190_v46  ;;  %v727_v26 = vsel %vm486_vm4, %v696_v49, %v726_v47 }
 0x2ee   : > { %v728_v53 = vsel %vm488_vm5, %v705_v37, %v727_v26 }
 0x2ef   : > { %v714_v45 = vsel %vm415_vm0, %v713_v4, %v709_v0 }
 0x2f0   : > { %v651_v35 = vpop.permute.xlu1 %650  ;;  %v729_v52 = vsel %vm490_vm6, %v714_v45, %v728_v53 }
 0x2f1   : > { %v722_v5 = vrot.slane %v651_v35, %v2190_v46 }
 0x2f3   : > { %v723_v57 = vsel %vm415_vm0, %v722_v5, %v718_v32 }
 0x2f4   : > { %v730_v31 = vsel %vm492_vm7, %v723_v57, %v729_v52  ;;  %v2577_v52 = vpack.c.bf16 %v2135_v14, %v2132_v13 }
 0x2f5   : > { %v732_v36 = vsel %vm495_vm8, %v730_v31, 0.0 }
 0x2f6   : > { %733 = vadd.xlane.f32.xlu0 %v732_v36 }
 0x383   : > { %v734_v43 = vpop.xlane.xlu0 %733 }
 0x384   : > { %v755_v48 = vrot.slane %v734_v43, %v2196_v60  ;;  %v739_v39 = vrot.slane %v734_v43, %v2194_v59  ;;  %v767_v12 = vrot.slane %v734_v43, %v2221_v34  ;;  %v743_v61 = vrot.slane %v734_v43, %v2207_v11 }
 0x385   : > { %v747_v51 = vrot.slane %v734_v43, %v2228_v38  ;;  %v1966_v60 = vmov 0.0|0.0   ;;  %v1739_v38 = vpack.c.bf16 %v2116_v6, %v2105_v1  ;;  %v1742_v6 = vpack.c.bf16 %v2119_v7, %v2111_v3 }
 0x386   : > { %1848 = vrcp.f32 %v755_v48  ;;  %1738 = vmatprep.subr.bf16.mxu0 %v1966_v60  ;;  %1741 = vmatprep.subr.bf16.mxu1 %v1966_v60  ;;  %v763_v47 = vrot.slane %v734_v43, %v2211_v28  ;;  %v2578_v48 = vpack.c.bf16 %v2143_v17, %v2138_v15  ;;  %v2579_v17 = vpack.c.bf16 %v2149_v19, %v2146_v18 }
 0x387   : > { %1850 = vrcp.f32 %v739_v39  ;;  %1740 = vmatpush3.bf16.msra.mxu0 %v1739_v38  ;;  %1743 = vmatpush3.bf16.msra.mxu1 %v1742_v6 }
 0x388   : > { %1852 = vrcp.f32 %v767_v12  ;;  %1744 = vmatprep.subr.bf16.mxu0 %v1966_v60  ;;  %1747 = vmatprep.subr.bf16.mxu1 %v1966_v60 }
 0x389   : > { %1854 = vrcp.f32 %v743_v61 }
 0x38a   : > { %1856 = vrcp.f32 %v747_v51 }
 0x390   : > { %v1849_v42 = vpop.eup %1848 }
 0x391   : > { %v1851_v4 = vpop.eup %1850  ;;  %v789_v21 = vmul.f32 %v1849_v42, %v2322_v55  ;;  %v790_v7 = vmul.f32 %v1849_v42, %v2352_v33 }
 0x392   : > { %v1853_v49 = vpop.eup %1852  ;;  %v777_v0 = vmul.f32 %v1851_v4, %v2311_v30  ;;  %v778_v11 = vmul.f32 %v1851_v4, %v2316_v20  ;;  %v751_v30 = vrot.slane %v734_v43, %v2192_v58 }
 0x393   : > { %1159 = vperm.xlu0 %1814, %v789_v21   ;;  %v799_v59 = vmul.f32 %v1853_v49, %v2369_v54  ;;  %v1855_v34 = vpop.eup %1854  ;;  %v1968_v54 = vmov 0.0  }
 0x394   : > { %803 = vperm.xlu1 %1815, %v777_v0   ;;  %v780_v55 = vmul.f32 %v1855_v34, %v2320_v25  ;;  %1686 = vmatprep.mubr.msk.f32.mxu0 %vm1967_vm9, %v1968_v54  ;;  %1858 = vrcp.f32 %v751_v30  ;;  %v781_v20 = vmul.f32 %v1855_v34, %v2327_v27  ;;  %v1857_v1 = vpop.eup %1856  ;;  %v759_v25 = vrot.slane %v734_v43, %v2200_v2  ;;  %v2582_v34 = vld [vmem:[#allocation8_spill] sm:$0xff] }
 0x395   : > { %1693 = vmatprep.mubr.msk.f32.mxu1 %vm1967_vm9, %v1968_v54  ;;  %v783_v58 = vmul.f32 %v1857_v1, %v2335_v63  ;;  %v784_v56 = vmul.f32 %v1857_v1, %v2339_v29 }
 0x396   : > { %1860 = vrcp.f32 %v759_v25 }
 0x397   : > { %1429 = vperm.xlu0 %1814, %v799_v59   ;;  %1862 = vrcp.f32 %v763_v47 }
 0x398   : > { %806 = vperm.xlu1 %1815, %v778_v11   ;;  %v2581_v11 = vld [vmem:[#allocation9_spill] sm:$0xff] }
 0x399   : > { %v2583_v38 = vpack.c.bf16 %v2581_v11, %v2582_v34 }
 0x39c   : > { %892 = vperm.xlu1 %1815, %v780_v55  }
 0x39e   : > { %v1859_v37 = vpop.eup %1858 }
 0x39f   : > { %v786_v27 = vmul.f32 %v1859_v37, %v2344_v10  ;;  %v787_v3 = vmul.f32 %v1859_v37, %v2348_v40  ;;  %v798_v40 = vmul.f32 %v1853_v49, %v2330_v62  ;;  %v2580_v49 = vpack.c.bf16 %v2159_v23, %v2156_v22 }
 0x3a0   : > { %895 = vperm.xlu1 %1815, %v781_v20   ;;  %v1861_v63 = vpop.eup %1860 }
 0x3a1   : > { %v792_v2 = vmul.f32 %v1861_v63, %v2357_v41  ;;  %v793_v29 = vmul.f32 %v1861_v63, %v2360_v16  ;;  %v1863_v45 = vpop.eup %1862 }
 0x3a2   : > { %v795_v10 = vmul.f32 %v1863_v45, %v2363_v50  ;;  %v796_v28 = vmul.f32 %v1863_v45, %v2366_v24  ;;  %v2576_v50 = vpack.c.bf16 %v2125_v9, %v2122_v8 }
 0x3a4   : > { %981 = vperm.xlu1 %1815, %v783_v58  }
 0x3a8   : > { %984 = vperm.xlu1 %1815, %v784_v56  }
 0x3ac   : > { %1070 = vperm.xlu1 %1815, %v786_v27  }
 0x3b0   : > { %1073 = vperm.xlu1 %1815, %v787_v3  }
 0x3b4   : > { %1162 = vperm.xlu1 %1815, %v790_v7  }
 0x3b8   : > { %1248 = vperm.xlu1 %1815, %v792_v2  }
 0x3bc   : > { %1251 = vperm.xlu1 %1815, %v793_v29  }
 0x3c0   : > { %1337 = vperm.xlu1 %1815, %v795_v10  }
 0x3c4   : > { %1340 = vperm.xlu1 %1815, %v796_v28  }
 0x3c8   : > { %1426 = vperm.xlu1 %1815, %v798_v40  }
 0x412   : > { %v1160_v12 = vpop.permute.xlu0 %1159 }
 0x413   : > { %v804_v35 = vpop.permute.xlu1 %803  ;;  %v1167_v4 = vrot.slane %v1160_v12, %v2188_v44 }
 0x414   : > { %v811_v32 = vrot.slane %v804_v35, %v2188_v44 }
 0x416   : > { %v1430_v55 = vpop.permute.xlu0 %1429 }
 0x417   : > { %v807_v33 = vpop.permute.xlu1 %806  ;;  %v1438_v6 = vrot.slane %v1430_v55, %v2190_v46 }
 0x418   : > { %v815_v41 = vrot.slane %v807_v33, %v2190_v46 }
 0x41a   : > { %v816_v26 = vsel %vm415_vm0, %v815_v41, %v811_v32 }
 0x41b   : > { %1687 = vmatmul.mubr.msk.f32.vlgmr.msra.gmra.mrb[0].mxu0 %vm495_vm8, %v816_v26  ;;  %v893_v16 = vpop.permute.xlu1 %892 }
 0x41c   : > { %1746 = vmatpush3.bf16.msra.mxu0 %v2576_v50  ;;  %1700 = vmatprep.mubr.msk.f32.mxu0 %vm1967_vm9, %v1968_v54  ;;  %v900_v24 = vrot.slane %v893_v16, %v2188_v44 }
 0x41d   : > { %1750 = vmatprep.subr.bf16.mxu0 %v1966_v60 }
 0x41f   : > { %v896_v62 = vpop.permute.xlu1 %895 }
 0x420   : > { %v904_v5 = vrot.slane %v896_v62, %v2190_v46 }
 0x422   : > { %v905_v53 = vsel %vm415_vm0, %v904_v5, %v900_v24 }
 0x423   : > { %1694 = vmatmul.mubr.msk.f32.vlgmr.msra.gmra.mrb[0].mxu1 %vm495_vm8, %v905_v53  ;;  %v982_v57 = vpop.permute.xlu1 %981 }
 0x424   : > { %1749 = vmatpush3.bf16.msra.mxu1 %v2577_v52  ;;  %1707 = vmatprep.mubr.msk.f32.mxu1 %vm1967_vm9, %v1968_v54  ;;  %v989_v9 = vrot.slane %v982_v57, %v2188_v44 }
 0x425   : > { %1753 = vmatprep.subr.bf16.mxu1 %v1966_v60 }
 0x427   : > { %v985_v8 = vpop.permute.xlu1 %984 }
 0x428   : > { %v993_v31 = vrot.slane %v985_v8, %v2190_v46 }
 0x42a   : > { %v994_v36 = vsel %vm415_vm0, %v993_v31, %v989_v9 }
 0x42b   : > { %1701 = vmatmul.mubr.msk.f32.vlgmr.msra.gmra.mrb[2].mxu0 %vm495_vm8, %v994_v36  ;;  %v1071_v43 = vpop.permute.xlu1 %1070 }
 0x42c   : > { %1752 = vmatpush3.bf16.msra.mxu0 %v2578_v48  ;;  %1714 = vmatprep.mubr.msk.f32.mxu0 %vm1967_vm9, %v1968_v54  ;;  %v1078_v14 = vrot.slane %v1071_v43, %v2188_v44 }
 0x42d   : > { %1756 = vmatprep.subr.bf16.mxu0 %v1966_v60 }
 0x42f   : > { %v1074_v13 = vpop.permute.xlu1 %1073 }
 0x430   : > { %v1082_v39 = vrot.slane %v1074_v13, %v2190_v46 }
 0x432   : > { %v1083_v61 = vsel %vm415_vm0, %v1082_v39, %v1078_v14 }
 0x433   : > { %1708 = vmatmul.mubr.msk.f32.vlgmr.msra.gmra.mrb[2].mxu1 %vm495_vm8, %v1083_v61  ;;  %v1163_v42 = vpop.permute.xlu1 %1162 }
 0x434   : > { %v1171_v15 = vrot.slane %v1163_v42, %v2190_v46  ;;  %1755 = vmatpush3.bf16.msra.mxu1 %v2579_v17  ;;  %1721 = vmatprep.mubr.msk.f32.mxu1 %vm1967_vm9, %v1968_v54 }
 0x435   : > { %1759 = vmatprep.subr.bf16.mxu1 %v1966_v60 }
 0x436   : > { %v1172_v21 = vsel %vm415_vm0, %v1171_v15, %v1167_v4 }
 0x437   : > { %1715 = vmatmul.mubr.msk.f32.vlgmr.msra.gmra.mrb[4].mxu0 %vm495_vm8, %v1172_v21  ;;  %v1249_v51 = vpop.permute.xlu1 %1248 }
 0x438   : > { %1758 = vmatpush3.bf16.msra.mxu0 %v2580_v49  ;;  %1728 = vmatprep.mubr.msk.f32.mxu0 %vm1967_vm9, %v1968_v54  ;;  %v1256_v18 = vrot.slane %v1249_v51, %v2188_v44 }
 0x43b   : > { %v1252_v0 = vpop.permute.xlu1 %1251 }
 0x43c   : > { %v1260_v19 = vrot.slane %v1252_v0, %v2190_v46 }
 0x43e   : > { %v1261_v59 = vsel %vm415_vm0, %v1260_v19, %v1256_v18 }
 0x43f   : > { %1722 = vmatmul.mubr.msk.f32.vlgmr.msra.gmra.mrb[4].mxu1 %vm495_vm8, %v1261_v59  ;;  %v1338_v60 = vpop.permute.xlu1 %1337 }
 0x440   : > { %1761 = vmatpush3.bf16.msra.mxu1 %v2583_v38  ;;  %1735 = vmatprep.mubr.msk.f32.mxu1 %vm1967_vm9, %v1968_v54  ;;  %v1345_v23 = vrot.slane %v1338_v60, %v2188_v44 }
 0x443   : > { %v1341_v22 = vpop.permute.xlu1 %1340 }
 0x444   : > { %v1349_v30 = vrot.slane %v1341_v22, %v2190_v46 }
 0x446   : > { %v1350_v20 = vsel %vm415_vm0, %v1349_v30, %v1345_v23 }
 0x447   : > { %1729 = vmatmul.mubr.msk.f32.vlgmr.msra.gmra.mrb[6].mxu0 %vm495_vm8, %v1350_v20  ;;  %v1427_v1 = vpop.permute.xlu1 %1426 }
 0x448   : > { %v1434_v58 = vrot.slane %v1427_v1, %v2188_v44 }
 0x44a   : > { %v1439_v25 = vsel %vm415_vm0, %v1438_v6, %v1434_v58 }
 0x44b   : > { %1736 = vmatmul.mubr.msk.f32.vlgmr.msra.gmra.mrb[6].mxu1 %vm495_vm8, %v1439_v25 }
 0x4ee   : > { %v885_v54 = vpop.f32.mrb[0].mxu0 }
 0x4ef   : > { %v1688_v56 = vpop.f32.mrb[1].mxu0 }
 0x4f6   : > { %v974_v37 = vpop.f32.mrb[0].mxu1 }
 0x4f7   : > { %v1520_v27 = vrot.slane %v974_v37, 7  ;;  %v1695_v47 = vpop.f32.mrb[1].mxu1 }
 0x4f9   : > { %v1521_v3 = vsel %vm480_vm1, %v1520_v27, %v885_v54 }
 0x4fe   : > { %v1063_v7 = vpop.f32.mrb[2].mxu0 }
 0x4ff   : > { %v1522_v63 = vrot.slane %v1063_v7, 6  ;;  %v1702_v2 = vpop.f32.mrb[3].mxu0 }
 0x501   : > { %v1523_v29 = vsel %vm482_vm2, %v1522_v63, %v1521_v3 }
 0x506   : > { %v1152_v46 = vpop.f32.mrb[2].mxu1 }
 0x507   : > { %v1524_v45 = vrot.slane %v1152_v46, 5  ;;  %v1709_v44 = vpop.f32.mrb[3].mxu1 }
 0x509   : > { %v1525_v10 = vsel %vm484_vm3, %v1524_v45, %v1523_v29 }
 0x50a   : > { %v1241_v28 = vpop.f32.mrb[4].mxu0 }
 0x50b   : > { %v1526_v40 = vrot.slane %v1241_v28, 4  ;;  %v1716_v35 = vpop.f32.mrb[5].mxu0 }
 0x50d   : > { %v1527_v33 = vsel %vm486_vm4, %v1526_v40, %v1525_v10 }
 0x512   : > { %v1330_v32 = vpop.f32.mrb[4].mxu1 }
 0x513   : > { %v1528_v41 = vrot.slane %v1330_v32, 3  ;;  %v1723_v26 = vpop.f32.mrb[5].mxu1 }
 0x515   : > { %v1529_v16 = vsel %vm488_vm5, %v1528_v41, %v1527_v33 }
 0x51a   : > { %v1419_v50 = vpop.f32.mrb[6].mxu0 }
 0x51b   : > { %v1530_v62 = vrot.slane %v1419_v50, 2  ;;  %v1730_v24 = vpop.f32.mrb[7].mxu0 }
 0x51d   : > { %v1531_v5 = vsel %vm490_vm6, %v1530_v62, %v1529_v16 }
 0x51e   : > { %v1508_v53 = vpop.f32.mrb[6].mxu1 }
 0x51f   : > { %v1532_v57 = vrot.slane %v1508_v53, 1  ;;  %v1737_v52 = vpop.f32.mrb[7].mxu1 }
 0x521   : > { %v1533_v8 = vsel %vm492_vm7, %v1532_v57, %v1531_v5 }
 0x522   : > { %1535 = vst [vmem:[%s202_s26] sm:$0xff] %v1533_v8 }
 0x523   : > { %1907 = shalt.err (!%p1904_p4)
}
 0x524   : > { %s1908_s5 = scalar_lea.hbm %s2517_s30, 128  ;;  %s1912_s7 = scalar_lea.hbm %s2565_s3, 256 }
 0x525   : > { %p1909_p5 = scmp.ne.s32.totalorder %s2517_s30, %s1908_s5  ;;  %p1913_p1 = scmp.lt.u32.totalorder %s2517_s30, %s2565_s3 }
 0x526   : > { %p1914_p3 = scmp.lt.u32.totalorder %s1912_s7, %s1908_s5  ;;  %p1916_p11 = scmp.lt.u32.totalorder %s1908_s5, %s2517_s30 }
 0x527   : > { %p1910_p7 = pnand %p1909_p5, %p2584_p12 }
 0x528   : > { %p1915_p6 = por %p1914_p3, %p1913_p1 }
 0x529   : > { %p1911_p9 = pneg %p1910_p7 }
 0x52a   : > { %p1917_p13 = por %p1916_p11, %p1915_p6 }
 0x52c   : > { %p1918_p8 = pnand %p1917_p13, %p1911_p9 }
 0x52e   : > { %1921 = shalt.err (!%p1918_p8)
}
 0x52f   : > { %1764 = dma.vmem_to_hbm [thread:$0]  (%p2584_p12), %s2519_s27, 128, %s2517_s30, %s1537_s9  }
 0x530 PF: > { %s1562_s19 = sand.u32 1, %s1948_s12   ;;  %p2585_p10 = scmp.ne.s32.totalorder %s2572_s25, 0 }
 0x531   : > { %p2586_p0 = scmp.ge.s32.totalorder %s1960_s15, 2  ;;  %s1563_s20 = scalar_lea.sflag [#allocation4], %s1562_s19 }
 0x533   : > { %p1771_p2 = pnand %p2586_p0, %p2585_p10 }
 0x535   : > { %1943 = dma.done.wait (!%p1771_p2), %s1563_s20, 128  }
 0x536   : > { %1945 = vsyncadd (!%p1771_p2), %s1563_s20, 4294967168  ;;  %p16_p4 = scmp.ge.s32.totalorder %s2015_s18, 4   ;;  %s2587_s12 = smov %s1952_s13 }
 0x537   : > { %s2588_s13 = smov %s1956_s14  ;;  %s2589_s14 = smov %s2027_s21 }
 0x538   : > { %s2590_s15 = smov %s2015_s18  ;;  %18 = sbr.rel (!%p16_p4) target bundleno = 5 (0x5), region = 80 }
 0x53f   :  { %1568 = vsyncpa [#allocation3], 1 }
 0x540   :  { %1570 = vsyncpa [#allocation3 + $0x1], 1 }
 0x541   :  { %1571 = vsyncpa [#allocation4], 1 }
 0x542   :  { %1573 = vsyncpa [#allocation4 + $0x1], 1 }

</bundles_post_ra>
